<compile_context>
chip_gen: v6e
topology: v6e:2x2x1
jax: 0.10.0
libtpu: 0.0.40
codegen_flags: <defaults>
</compile_context>

<pallas_src>
import jax
import jax.numpy as jnp
from jax.experimental import pallas as pl
from jax.experimental.pallas import tpu as pltpu  # noqa: F401 (used when scaling: CompilerParams / grid semantics)

# ----------------------------- configuration --------------------------------
B = 2           # batch size
N = 8           # n_nodes
SLIDE_WIN = 16  # sliding window (GraphLayer in_channels)
EMBED = 32      # embed_dim (GraphLayer out_channels, heads=1)
TOPK = 4
NEG_SLOPE = 0.2
BN_EPS = 1e-5
BN = B * N      # folded batch*node row count
MASK_NEG = -1e30

# MXU operand dtype.  Per the perf review, flip to jnp.bfloat16 once BN/B is
# scaled up (MXU is bf16-native on v5e/v6e/v7x, 3-6x throughput); kept float32
# at this toy size (review: "negligible at BN=16") so the f32 reference check
# stays tight (also addresses the "tighten numerics" correctness note).
MXU_DTYPE = jnp.float32

# --------------------- packed parameter-slab row layout ---------------------
# One f32 [P_ROWS, P_COLS] slab -> a single DMA for every batch-invariant term.
ROW_WAUG = 0                        # [SLIDE_WIN, E+2]: W_lin^T | W_lin^T@att_i | W_lin^T@att_j
ROW_PERROW = ROW_WAUG + SLIDE_WIN   # [BN, E+2]: emb*bn2_scale | emb@att_em_i | emb@att_em_j (tiled B times)
ROW_VP = ROW_PERROW + BN            # 4 rows: gnn_bias, bn1_scale, bn1_shift, bn2_shift (cols 0:E)
ROW_BOUT = ROW_VP + 4               # 1 row : b_out replicated across lanes
ROW_WOUT = ROW_VP + 8               # [EMBED, 1] column: OutLayer weight (row start is a multiple of 8)
P_ROWS = ROW_WOUT + EMBED           # 72
P_COLS = EMBED + 2                  # 34


# ---------------------- fused GDN forward (single invocation) ---------------
def gdn_kernel(x_ref, slab_ref, bias_ref, out_ref):
    # one fused MXU push: [BN, SLIDE_WIN] @ [SLIDE_WIN, E+2]
    x = x_ref[...].astype(MXU_DTYPE)
    w_aug = slab_ref[ROW_WAUG:ROW_WAUG + SLIDE_WIN, :].astype(MXU_DTYPE)
    xw = jnp.dot(x, w_aug, preferred_element_type=jnp.float32)       # [BN, E+2]
    xl = xw[:, 0:EMBED]                                               # x @ W_lin^T

    # attention logits: s_i (column) and s_j (row); embedding terms come
    # precomputed from the slab.  Only the tiny [BN,1] s_j column is transposed.
    s_i = xw[:, EMBED:EMBED + 1] + slab_ref[ROW_PERROW:ROW_PERROW + BN, EMBED:EMBED + 1]
    s_j = xw[:, EMBED + 1:EMBED + 2] + slab_ref[ROW_PERROW:ROW_PERROW + BN, EMBED + 1:EMBED + 2]
    a = s_i + jnp.transpose(s_j)                                      # [BN, BN]
    a = jnp.where(a >= 0, a, NEG_SLOPE * a)                           # leaky_relu
    a = a + bias_ref[...]                                             # additive mask bias (0 / -1e30)

    # softmax over source nodes j (exact divide; every row has a self-loop,
    # so the denominator is strictly positive)
    p = jnp.exp(a - jnp.max(a, axis=-1, keepdims=True))
    alpha = p / jnp.sum(p, axis=-1, keepdims=True)

    # aggregation on the MXU: out_i = sum_j alpha[i, j] * x_lin[j]    [BN, E]
    agg = jnp.dot(alpha.astype(MXU_DTYPE), xl.astype(MXU_DTYPE),
                  preferred_element_type=jnp.float32)

    gnn_bias = slab_ref[ROW_VP + 0:ROW_VP + 1, 0:EMBED]
    bn1_scale = slab_ref[ROW_VP + 1:ROW_VP + 2, 0:EMBED]
    bn1_shift = slab_ref[ROW_VP + 2:ROW_VP + 3, 0:EMBED]
    bn2_shift = slab_ref[ROW_VP + 3:ROW_VP + 4, 0:EMBED]
    emb_scaled = slab_ref[ROW_PERROW:ROW_PERROW + BN, 0:EMBED]        # emb * bn2_scale (tiled)

    # GNNLayer: +bias, BatchNorm1d (eval) + ReLU
    h = jnp.maximum((agg + gnn_bias) * bn1_scale + bn1_shift, 0.0)
    # multiply by node embedding fused with bn_outlayer_in scale, + shift, ReLU
    # (Dropout in eval mode == identity)
    h = jnp.maximum(h * emb_scaled + bn2_shift, 0.0)

    # OutLayer (layer_num=1) Linear(EMBED, 1): [BN,E] @ [E,1], then transpose
    # the tiny [BN,1] result vreg to a lane-dense [1,BN] row (no relayout of h).
    w_out = slab_ref[ROW_WOUT:ROW_WOUT + EMBED, 0:1].astype(MXU_DTYPE)
    y = jnp.dot(h.astype(MXU_DTYPE), w_out, preferred_element_type=jnp.float32)  # [BN, 1]
    out_ref[...] = jnp.transpose(y) + slab_ref[ROW_BOUT:ROW_BOUT + 1, 0:BN]


# ------------------- one-time parameter packing (hoisted) --------------------
def _pack_param_slab(params):
    emb = params["embedding"]
    w_lin_t = params["w_lin"].T                                       # [W, E]
    w_aug = jnp.concatenate(
        [w_lin_t,
         (w_lin_t @ params["att_i"])[:, None],
         (w_lin_t @ params["att_j"])[:, None]], axis=1)               # [W, E+2]
    per_row = jnp.concatenate(
        [emb * params["bn2_scale"][None, :],
         (emb @ params["att_em_i"])[:, None],
         (emb @ params["att_em_j"])[:, None]], axis=1)                # [N, E+2]
    per_row = jnp.tile(per_row, (B, 1))                               # [BN, E+2]
    vp = jnp.stack([params["gnn_bias"], params["bn1_scale"],
                    params["bn1_shift"], params["bn2_shift"]], axis=0)  # [4, E]

    slab = jnp.zeros((P_ROWS, P_COLS), jnp.float32)
    slab = slab.at[ROW_WAUG:ROW_WAUG + SLIDE_WIN, :].set(w_aug)
    slab = slab.at[ROW_PERROW:ROW_PERROW + BN, :].set(per_row)
    slab = slab.at[ROW_VP:ROW_VP + 4, 0:EMBED].set(vp)
    slab = slab.at[ROW_BOUT, :].set(params["b_out"][0])
    slab = slab.at[ROW_WOUT:ROW_WOUT + EMBED, 0].set(params["w_out"].reshape(EMBED))
    return slab


def make_gdn_forward(params, mask):
    """One-time (per parameter set) packing; returns a jitted per-call forward."""
    slab = _pack_param_slab(params)
    mask_bd = jnp.kron(jnp.eye(B, dtype=jnp.float32), mask)           # [BN, BN] block-diagonal
    mask_bias = jnp.where(mask_bd > 0, 0.0, MASK_NEG).astype(jnp.float32)

    call = pl.pallas_call(
        gdn_kernel,
        out_shape=jax.ShapeDtypeStruct((1, BN), jnp.float32),
        in_specs=[
            pl.BlockSpec((BN, SLIDE_WIN), lambda: (0, 0)),            # x (all batches folded)
            pl.BlockSpec((P_ROWS, P_COLS), lambda: (0, 0)),           # packed parameter slab
            pl.BlockSpec((BN, BN), lambda: (0, 0)),                   # additive mask bias
        ],
        out_specs=pl.BlockSpec((1, BN), lambda: (0, 0)),              # lane-dense output row
    )
    # TODO(synk): once B/BN scales, move B onto a grid axis with
    # dimension_semantics=("parallel",) (v7x dual TensorCore), drop the kron
    # block-diagonal densification, pad the output lane dim to a multiple of 128
    # and flip MXU_DTYPE to bfloat16; at B=2/BN=16 per-grid-step overhead
    # (~0.35us) exceeds the whole kernel, so one fused ungridded call is kept.

    @jax.jit
    def forward(data):
        x = data.reshape(BN, SLIDE_WIN).astype(jnp.float32)
        return call(x, slab, mask_bias).reshape(B, N)

    return forward


# ------------------------------ glue (plain JAX) -----------------------------
def learned_graph_mask(embedding, topk, n):
    """Cosine-similarity graph + top-k -> dense {0,1} adjacency mask [N, N]."""
    # one-time, tiny (8x8): plain JAX per perf review; eps guards zero rows.
    nrm = jnp.maximum(jnp.sqrt(jnp.sum(embedding * embedding, axis=-1,
                                       keepdims=True)), 1e-8)
    cos = (embedding @ embedding.T) / (nrm * nrm.T)
    _, topk_idx = jax.lax.top_k(cos, topk)
    # edge set per target i: {j in topk(i), j != i} U {i}
    # (replicates remove_self_loops + add_self_loops exactly)
    onehot = jax.nn.one_hot(topk_idx, n, dtype=jnp.float32)            # [N, K, N]
    mask = jnp.clip(jnp.sum(onehot, axis=1), 0.0, 1.0)                 # [N, N]
    return jnp.where(jnp.eye(n, dtype=bool), 1.0, mask)


def init_params(key):
    ks = jax.random.split(key, 12)
    u = lambda k, shape, s=0.5: jax.random.uniform(k, shape, jnp.float32, -s, s)
    params = {
        "embedding": u(ks[0], (N, EMBED)),             # nn.Embedding(n_nodes, embed_dim)
        "w_lin": u(ks[1], (EMBED, SLIDE_WIN)),         # GraphLayer.lin.weight [out, in]
        "att_i": u(ks[2], (EMBED,)),
        "att_j": u(ks[3], (EMBED,)),
        "att_em_i": u(ks[4], (EMBED,)) * 0.1,          # zeros in reset_parameters; nonzero to exercise path
        "att_em_j": u(ks[5], (EMBED,)) * 0.1,
        "gnn_bias": u(ks[6], (EMBED,)),
        "w_out": u(ks[10], (1, EMBED)),                # OutLayer Linear(embed_dim, 1)
        "b_out": u(ks[11], (1,)),
    }
    # BatchNorm1d eval-mode: running_mean=0, running_var=1 -> scale=gamma/sqrt(1+eps), shift=beta
    # TODO(synk): if trained running stats are loaded, derive scale/shift from them instead.
    bn1_g, bn1_b = u(ks[7], (EMBED,)) + 1.0, u(ks[7], (EMBED,)) * 0.1
    bn2_g, bn2_b = u(ks[8], (EMBED,)) + 1.0, u(ks[9], (EMBED,)) * 0.1
    inv = 1.0 / jnp.sqrt(1.0 + BN_EPS)
    params["bn1_scale"], params["bn1_shift"] = bn1_g * inv, bn1_b
    params["bn2_scale"], params["bn2_shift"] = bn2_g * inv, bn2_b
    return params


def gdn_reference(data, p, mask):
    """Pure-JAX f32 reference of the same (eval-mode) forward, for validation."""
    emb = p["embedding"]

    def per_batch(xb):
        xl = xb @ p["w_lin"].T
        s_i = xl @ p["att_i"] + emb @ p["att_em_i"]
        s_j = xl @ p["att_j"] + emb @ p["att_em_j"]
        a = s_i[:, None] + s_j[None, :]
        a = jnp.where(a >= 0, a, NEG_SLOPE * a)
        a = jnp.where(mask > 0, a, MASK_NEG)
        e = jnp.exp(a - a.max(-1, keepdims=True)) * mask
        alpha = e / e.sum(-1, keepdims=True)
        agg = alpha @ xl + p["gnn_bias"]
        h = jnp.maximum(agg * p["bn1_scale"] + p["bn1_shift"], 0.0)
        h = h * emb
        h = jnp.maximum(h * p["bn2_scale"] + p["bn2_shift"], 0.0)
        return h @ p["w_out"][0] + p["b_out"][0]

    return jax.vmap(per_batch)(data)


# ----------------------------------- main ------------------------------------
if __name__ == "__main__":
    key = jax.random.PRNGKey(0)
    k_data, k_param = jax.random.split(key)
    data = jax.random.normal(k_data, (B, N, SLIDE_WIN), jnp.float32)
    params = init_params(k_param)

    # learned graph (one-time glue, plain JAX): cosine similarity + top-k mask
    mask = learned_graph_mask(params["embedding"], TOPK, N)
    # one-time parameter packing / mask-bias construction hoisted out of the per-call path
    forward = make_gdn_forward(params, mask)

    out = jax.block_until_ready(forward(data))
    ref = jax.block_until_ready(gdn_reference(data, params, mask))

    assert out.shape == (B, N)
    # exact-divide softmax + f32 MXU operands at this toy size -> tight check;
    # flip MXU_DTYPE to bfloat16 when scaling, which loosens the tolerance.
    tol = 1e-4 if MXU_DTYPE == jnp.float32 else 5e-2
    assert bool(jnp.allclose(out, ref, rtol=tol, atol=tol)), "mismatch vs reference"

    print("KERNEL_OK")
</pallas_src>

<mosaic_0001>
module attributes {stable_mosaic.version = 11 : i64} {
  func.func @gdn_kernel(%arg0: memref<16x16xf32, #tpu.memory_space<vmem>>, %arg1: memref<72x34xf32, #tpu.memory_space<vmem>>, %arg2: memref<16x16xf32, #tpu.memory_space<vmem>>, %arg3: memref<1x16xf32, #tpu.memory_space<vmem>>) attributes {dimension_semantics = [], scalar_prefetch = 0 : i64, scratch_operands = 0 : i64, tpu.core_type = #tpu.core_type<tc>} {
    %c0 = arith.constant 0 : index
    %c0_0 = arith.constant 0 : index
    %0 = vector.load %arg0[%c0, %c0_0] : memref<16x16xf32, #tpu.memory_space<vmem>>, vector<16x16xf32>
    %c0_1 = arith.constant 0 : index
    %c0_2 = arith.constant 0 : index
    %1 = vector.load %arg1[%c0_1, %c0_2] : memref<72x34xf32, #tpu.memory_space<vmem>>, vector<16x34xf32>
    %cst = arith.constant dense<0.000000e+00> : vector<16x34xf32>
    %2 = tpu.matmul %0, %1, %cst {dimension_numbers = #tpu.dot_dimension_numbers<[1], [0], [0], [1], [0, 0, 1, 1], [], []>} : vector<16x16xf32>, vector<16x34xf32>, vector<16x34xf32> -> vector<16x34xf32>
    %3 = vector.extract_strided_slice %2 {offsets = [0, 0], sizes = [16, 32], strides = [1, 1]} : vector<16x34xf32> to vector<16x32xf32>
    %4 = vector.extract_strided_slice %2 {offsets = [0, 32], sizes = [16, 1], strides = [1, 1]} : vector<16x34xf32> to vector<16x1xf32>
    %c16 = arith.constant 16 : index
    %c32 = arith.constant 32 : index
    %5 = vector.load %arg1[%c16, %c32] : memref<72x34xf32, #tpu.memory_space<vmem>>, vector<16x1xf32>
    %6 = arith.addf %4, %5 : vector<16x1xf32>
    %7 = vector.extract_strided_slice %2 {offsets = [0, 33], sizes = [16, 1], strides = [1, 1]} : vector<16x34xf32> to vector<16x1xf32>
    %c16_3 = arith.constant 16 : index
    %c33 = arith.constant 33 : index
    %8 = vector.load %arg1[%c16_3, %c33] : memref<72x34xf32, #tpu.memory_space<vmem>>, vector<16x1xf32>
    %9 = arith.addf %7, %8 : vector<16x1xf32>
    %10 = tpu.transpose %9, [1, 0] : vector<16x1xf32> -> vector<1x16xf32>
    %11 = vector.broadcast %6 : vector<16x1xf32> to vector<16x16xf32>
    %12 = vector.broadcast %10 : vector<1x16xf32> to vector<16x16xf32>
    %13 = arith.addf %11, %12 : vector<16x16xf32>
    %cst_4 = arith.constant 0.000000e+00 : f32
    %14 = vector.broadcast %cst_4 : f32 to vector<16x16xf32>
    %15 = arith.cmpf oge, %13, %14 : vector<16x16xf32>
    %cst_5 = arith.constant 2.000000e-01 : f32
    %16 = vector.broadcast %cst_5 : f32 to vector<16x16xf32>
    %17 = arith.mulf %16, %13 : vector<16x16xf32>
    %18 = arith.select %15, %13, %17 : vector<16x16xi1>, vector<16x16xf32>
    %c0_6 = arith.constant 0 : index
    %c0_7 = arith.constant 0 : index
    %19 = vector.load %arg2[%c0_6, %c0_7] : memref<16x16xf32, #tpu.memory_space<vmem>>, vector<16x16xf32>
    %20 = arith.addf %18, %19 : vector<16x16xf32>
    %cst_8 = arith.constant dense<0xFF800000> : vector<16xf32>
    %21 = vector.multi_reduction <maximumf>, %20, %cst_8 [1] : vector<16x16xf32> to vector<16xf32>
    %22 = vector.shape_cast %21 : vector<16xf32> to vector<16x1xf32>
    %23 = vector.broadcast %22 : vector<16x1xf32> to vector<16x16xf32>
    %24 = arith.subf %20, %23 : vector<16x16xf32>
    %25 = math.exp %24 : vector<16x16xf32>
    %cst_9 = arith.constant dense<0.000000e+00> : vector<16xf32>
    %26 = vector.multi_reduction <add>, %25, %cst_9 [1] : vector<16x16xf32> to vector<16xf32>
    %27 = vector.shape_cast %26 : vector<16xf32> to vector<16x1xf32>
    %28 = vector.broadcast %27 : vector<16x1xf32> to vector<16x16xf32>
    %29 = arith.divf %25, %28 : vector<16x16xf32>
    %cst_10 = arith.constant dense<0.000000e+00> : vector<16x32xf32>
    %30 = tpu.matmul %29, %3, %cst_10 {dimension_numbers = #tpu.dot_dimension_numbers<[1], [0], [0], [1], [0, 0, 1, 1], [], []>} : vector<16x16xf32>, vector<16x32xf32>, vector<16x32xf32> -> vector<16x32xf32>
    %c32_11 = arith.constant 32 : index
    %c0_12 = arith.constant 0 : index
    %31 = vector.load %arg1[%c32_11, %c0_12] : memref<72x34xf32, #tpu.memory_space<vmem>>, vector<1x32xf32>
    %c33_13 = arith.constant 33 : index
    %c0_14 = arith.constant 0 : index
    %32 = vector.load %arg1[%c33_13, %c0_14] : memref<72x34xf32, #tpu.memory_space<vmem>>, vector<1x32xf32>
    %c34 = arith.constant 34 : index
    %c0_15 = arith.constant 0 : index
    %33 = vector.load %arg1[%c34, %c0_15] : memref<72x34xf32, #tpu.memory_space<vmem>>, vector<1x32xf32>
    %c35 = arith.constant 35 : index
    %c0_16 = arith.constant 0 : index
    %34 = vector.load %arg1[%c35, %c0_16] : memref<72x34xf32, #tpu.memory_space<vmem>>, vector<1x32xf32>
    %c16_17 = arith.constant 16 : index
    %c0_18 = arith.constant 0 : index
    %35 = vector.load %arg1[%c16_17, %c0_18] : memref<72x34xf32, #tpu.memory_space<vmem>>, vector<16x32xf32>
    %36 = vector.broadcast %31 : vector<1x32xf32> to vector<16x32xf32>
    %37 = arith.addf %30, %36 : vector<16x32xf32>
    %38 = vector.broadcast %32 : vector<1x32xf32> to vector<16x32xf32>
    %39 = arith.mulf %37, %38 : vector<16x32xf32>
    %40 = vector.broadcast %33 : vector<1x32xf32> to vector<16x32xf32>
    %41 = arith.addf %39, %40 : vector<16x32xf32>
    %cst_19 = arith.constant 0.000000e+00 : f32
    %42 = vector.broadcast %cst_19 : f32 to vector<16x32xf32>
    %43 = arith.maximumf %41, %42 : vector<16x32xf32>
    %44 = arith.mulf %43, %35 : vector<16x32xf32>
    %45 = vector.broadcast %34 : vector<1x32xf32> to vector<16x32xf32>
    %46 = arith.addf %44, %45 : vector<16x32xf32>
    %cst_20 = arith.constant 0.000000e+00 : f32
    %47 = vector.broadcast %cst_20 : f32 to vector<16x32xf32>
    %48 = arith.maximumf %46, %47 : vector<16x32xf32>
    %c40 = arith.constant 40 : index
    %c0_21 = arith.constant 0 : index
    %49 = vector.load %arg1[%c40, %c0_21] : memref<72x34xf32, #tpu.memory_space<vmem>>, vector<32x1xf32>
    %cst_22 = arith.constant dense<0.000000e+00> : vector<16x1xf32>
    %50 = tpu.matmul %48, %49, %cst_22 {dimension_numbers = #tpu.dot_dimension_numbers<[1], [0], [0], [1], [0, 0, 1, 1], [], []>} : vector<16x32xf32>, vector<32x1xf32>, vector<16x1xf32> -> vector<16x1xf32>
    %51 = tpu.transpose %50, [1, 0] : vector<16x1xf32> -> vector<1x16xf32>
    %c36 = arith.constant 36 : index
    %c0_23 = arith.constant 0 : index
    %52 = vector.load %arg1[%c36, %c0_23] : memref<72x34xf32, #tpu.memory_space<vmem>>, vector<1x16xf32>
    %53 = arith.addf %51, %52 : vector<1x16xf32>
    %c0_24 = arith.constant 0 : index
    %c0_25 = arith.constant 0 : index
    %54 = vector.load %arg3[%c0_24, %c0_25] : memref<1x16xf32, #tpu.memory_space<vmem>>, vector<1x16xf32>
    tpu.vector_store %arg3[%c0_24, %c0_25], %53 {strides = array<i32>} : memref<1x16xf32, #tpu.memory_space<vmem>>, vector<1x16xf32>,
    return
  }
}

</mosaic_0001>

<bundles_post_ra>
// kernel: forward.1
= control target key start
LH: loop header
LB: loop body
LE: loop exit
PB: predicated region body
PF: predicated region fallthrough
CT: control target
= control target key end

     0   :  { %8 = vsyncpa [#allocation3], 0  ;;  %s658_s0 = inlined_call_operand.hbm [shape: f32[16,16], index: 0, kind: input, shape index: {}]   ;;  %s659_s1 = inlined_call_operand.hbm [shape: f32[72,34], index: 1, kind: input, shape index: {}]   ;;  %s660_s2 = inlined_call_operand.hbm [shape: f32[16,16], index: 2, kind: input, shape index: {}]   ;;  %s661_s3 = inlined_call_operand.vmem [shape: f32[1,16], index: 3, kind: output, shape index: {}]  }
   0x1   :  { %9 = vsyncpa [#allocation5], 0  ;;  %s603_s12 = smov [#allocation4]   ;;  %s604_s14 = smov [#allocation2]  }
   0x2   :  { %s27_s13 = sshll.u32 %s603_s12, 4  ;;  %s15_s15 = sshll.u32 %s604_s14, 4  ;;  %s28_s13 = int_to_ptr.vmem [resolvable:$true] %s27_s13  ;;  %s16_s15 = int_to_ptr.vmem [resolvable:$true] %s15_s15 }
   0x3   :  { %s547_s16 = scalar_lea.vmem %s28_s13, 1152  ;;  %p552_p1 = scmp.lt.s32.totalorder %s28_s13, %s28_s13 }
   0x4   :  { %p548_p0 = scmp.ne.s32.totalorder %s28_s13, %s547_s16  ;;  %p553_p2 = scmp.lt.s32.totalorder %s547_s16, %s547_s16 }
   0x6   :  { %p554_p3 = por %p553_p2, %p552_p1 }
   0x8   :  { %p555_p4 = pnand %p554_p3, %p548_p0 }
   0xa   :  { %558 = shalt.err (!%p555_p4)
}
   0xb   :  { %s605_s17 = smov 128   ;;  %s606_s18 = smov 8  }
   0xc   :  { %33 = dma.hbm_to_vmem [thread:$0]  %s659_s1, 1152, %s28_s13, [#allocation5], %s605_s17, %s605_s17, %s606_s18  }
   0xd   :  { %s567_s21 = scalar_lea.vmem %s16_s15, 256  ;;  %p572_p6 = scmp.lt.s32.totalorder %s16_s15, %s16_s15 }
   0xe   :  { %p568_p5 = scmp.ne.s32.totalorder %s16_s15, %s567_s21  ;;  %p573_p7 = scmp.lt.s32.totalorder %s567_s21, %s567_s21 }
  0x10   :  { %p574_p8 = por %p573_p7, %p572_p6 }
  0x12   :  { %p575_p9 = pnand %p574_p8, %p568_p5 }
  0x14   :  { %578 = shalt.err (!%p575_p9)
}
  0x15   :  { %21 = dma.hbm_to_vmem [thread:$0]  %s658_s0, 256, %s16_s15, [#allocation3], %s605_s17, %s605_s17, %s606_s18  }
  0x16   :  { %s607_s24 = smov [#allocation6]  }
  0x17   :  { %s39_s25 = sshll.u32 %s607_s24, 4  ;;  %s40_s25 = int_to_ptr.vmem [resolvable:$true] %s39_s25 }
  0x18   :  { %s587_s26 = scalar_lea.vmem %s40_s25, 256  ;;  %p592_p11 = scmp.lt.s32.totalorder %s40_s25, %s40_s25 }
  0x19   :  { %p588_p10 = scmp.ne.s32.totalorder %s40_s25, %s587_s26  ;;  %p593_p12 = scmp.lt.s32.totalorder %s587_s26, %s587_s26 }
  0x1b   :  { %p594_p13 = por %p593_p12, %p592_p11 }
  0x1d   :  { %p595_p0 = pnand %p594_p13, %p588_p10 }
  0x1f   :  { %598 = shalt.err (!%p595_p0)
}
  0x20   :  { %45 = dma.hbm_to_vmem [thread:$0]  %s660_s2, 256, %s40_s25, [#allocation5], %s605_s17, %s605_s17, %s606_s18  }
  0x21   :  { %599 = dma.done.wait [#allocation3], 256  }
  0x22   :  { %600 = vsyncadd [#allocation3], 4294967040 }
  0x23   :  { %601 = dma.done.wait [#allocation5], 1408  }
  0x24   :  { %602 = vsyncadd [#allocation5], 4294965888  ;;  %vm59_vm0 = vcmask 130048   ;;  %v58_v0 = vld [vmem:[#allocation4 + $0x8] sm:$0xff]  ;;  %v57_v1 = vld [vmem:[#allocation4] sm:$0xff]  ;;  %v608_v4 = vmov 32   ;;  %v193_v13 = vlaneseq }
  0x25   :  { %v55_v2 = vld [vmem:[#allocation2] sm:$0xff]  ;;  %496 = vmatprep.subr.mxu1 %v58_v0  ;;  %v56_v3 = vld [vmem:[#allocation2 + $0x8] sm:$0xff]  ;;  %529 = vset.pattern.permute.xlu1 %v608_v4  ;;  %s609_s0 = smov 95   ;;  %v205_v23 = vld [vmem:[#allocation6] sm:$0xff]  ;;  %vm348_vm3 = vcmask 261120   ;;  %vm464_vm4 = vcmask 122880  }
  0x26   :  { %500 = vmatprep.mubr.msk.f32.mxu1 %vm59_vm0, %v55_v2  ;;  %497 = vmatpush3.msra.mxu1 %v58_v0  ;;  %v641_v6 = vld [vmem:[#allocation4 + $0x10] sm:$0xff]  ;;  %v644_v9 = vld [vmem:[#allocation4 + $0x18] sm:$0xff]  ;;  %v194_v14 = vshrl.u32 %v193_v13, 7  ;;  %v347_v48 = vld [vmem:[#allocation4 + $0x40] sm:$0xff] }
  0x27   :  { %498 = vmatprep.subr.mxu1 %v57_v1  ;;  %v206_v22 = vld [vmem:[#allocation6 + $0x8] sm:$0xff]  ;;  %v346_v49 = vld [vmem:[#allocation4 + $0x38] sm:$0xff]  ;;  %510 = vmatprep.subr.mxu0 %v347_v48  ;;  %v344_v51 = vld [vmem:[#allocation4 + $0x28] sm:$0xff] }
  0x28   :  { %499 = vmatpush3.msra.mxu1 %v57_v1  ;;  %v195_v16 = vsub.s32 0, %v194_v14  ;;  %511 = vmatpush3.msra.mxu0 %v347_v48  ;;  %v345_v50 = vld [vmem:[#allocation4 + $0x30] sm:$0xff]  ;;  %v474_v52 = vld [vmem:[#allocation4 + $0x20] ss:$0 sm:$0xff]  ;;  %v477_v53 = vld [vmem:[#allocation4 + $0x21] ss:$0 sm:$0xff] }
  0x29   :  { %501 = vmatmul.mubr.msk.f32.vlgmr.msra.gmra.mxu1 %vm59_vm0, %v56_v3  ;;  %512 = vmatprep.subr.mxu0 %v346_v49  ;;  %v478_v56 = vld [vmem:[#allocation4 + $0x22] ss:$0 sm:$0xff]  ;;  %v479_v1 = vld [vmem:[#allocation4 + $0x23] ss:$0 sm:$0xff] }
  0x2a   :  { %513 = vmatpush3.msra.mxu0 %v346_v49 }
  0x2b   :  { %514 = vmatprep.subr.mxu0 %v345_v50 }
  0x2c   :  { %515 = vmatpush3.msra.mxu0 %v345_v50 }
  0x2d   :  { %516 = vmatprep.subr.mxu0 %v344_v51 }
  0x2e   :  { %517 = vmatpush3.msra.mxu0 %v344_v51 }
  0xe9   :  { %v502_v5 = vpop.f32.mrf.mxu1 }
  0xea   :  { %503 = vmatprep.subr.mxu1 %v502_v5  ;;  %v144_v10 = vadd.f32 %v502_v5, %v644_v9 }
  0xeb   :  { %v132_v7 = vpop.f32.mrf.mxu1  ;;  %504 = vmatpush3.msra.mxu1 %v502_v5 }
  0xec   :  { %505 = vmatprep.subr.mxu1 %v132_v7  ;;  %v143_v8 = vadd.f32 %v641_v6, %v132_v7 }
  0xed   :  { %506 = vmatpush3.msra.mxu1 %v132_v7 }
  0xee   :  { %186 = vperm.xlu1 %529, %v143_v8   ;;  %147 = vrot.lane.b32.xlu0 %v143_v8, %s609_s0 }
  0xf2   :  { %190 = vperm.xlu1 %529, %v144_v10   ;;  %149 = vrot.lane.b32.xlu0 %v144_v10, %s609_s0 }
 0x160   :  { %v148_v11 = vpop.permute.xlu0 %147 }
 0x161   :  { %153 = vxpose.xlu0.b32.start [1/2] (short) (narrow) %v148_v11, 8 }
 0x164   :  { %v150_v12 = vpop.permute.xlu0 %149 }
 0x165   :  { %154 = vxpose.xlu0.b32.end [2/2] (short) (narrow) %v150_v12, 8  ;;  %v462_v12 = vld [vmem:[#allocation4 + $0x24] sm:$0x1] }
 0x169   :  { %v187_v15 = vpop.permute.xlu1 %186 }
 0x16d   :  { %v191_v19 = vpop.permute.xlu1 %190 }
 0x18e   :  { %530 = vset.pattern.permute.xlu0 %v608_v4 }
 0x1dd   :  { %v169_v17 = vpop.trf.xlu0 }
 0x1de   :  { %v196_v18 = vrot.slane %v169_v17, %v195_v16 }
 0x1e0   :  { %v197_v20 = vadd.f32 %v196_v18, %v187_v15  ;;  %v198_v21 = vadd.f32 %v196_v18, %v191_v19 }
 0x1e2   :  { %v201_v24 = vmul.f32 0.2, %v197_v20  ;;  %v202_v25 = vmul.f32 0.2, %v198_v21  ;;  %vm200_vm1 = vcmp.ge.f32.partialorder %v198_v21, 0.0  ;;  %vm199_vm2 = vcmp.ge.f32.partialorder %v197_v20, 0.0 }
 0x1e4   :  { %v204_v26 = vsel %vm200_vm1, %v198_v21, %v202_v25  ;;  %v203_v27 = vsel %vm199_vm2, %v197_v20, %v201_v24 }
 0x1e5   :  { %v208_v28 = vadd.f32 %v206_v22, %v204_v26  ;;  %v207_v29 = vadd.f32 %v205_v23, %v203_v27 }
 0x1e7   :  { %v212_v30 = vsel %vm59_vm0, %v208_v28, -inf  ;;  %v209_v31 = vsel %vm59_vm0, %v207_v29, -inf }
 0x1e8   :  { %213 = vmax.xlane.f32.xlu0 %v212_v30  ;;  %210 = vmax.xlane.f32.xlu1 %v209_v31 }
 0x271   :  { %v214_v32 = vpop.xlane.xlu0 %213  ;;  %v211_v33 = vpop.xlane.xlu1 %210 }
 0x272   :  { %v216_v34 = vsub.f32 %v208_v28, %v214_v32  ;;  %v215_v35 = vsub.f32 %v207_v29, %v211_v33 }
 0x274   :  { %v217_v36 = vmul.f32 1.442695, %v215_v35  ;;  %v219_v37 = vmul.f32 1.442695, %v216_v34 }
 0x276   :  { %531 = vpow2.f32 %v217_v36 }
 0x277   :  { %533 = vpow2.f32 %v219_v37 }
 0x283   :  { %v532_v38 = vpop.eup %531 }
 0x284   :  { %v221_v39 = vsel %vm59_vm0, %v532_v38, 0.0  ;;  %v534_v40 = vpop.eup %533 }
 0x285   :  { %222 = vadd.xlane.f32.xlu1 %v221_v39  ;;  %v224_v41 = vsel %vm59_vm0, %v534_v40, 0.0 }
 0x289   :  { %225 = vadd.xlane.f32.xlu1 %v224_v41 }
 0x30e   :  { %v223_v42 = vpop.xlane.xlu1 %222 }
 0x30f   :  { %535 = vrcp.f32 %v223_v42 }
 0x312   :  { %v226_v43 = vpop.xlane.xlu1 %225 }
 0x313   :  { %537 = vrcp.f32 %v226_v43 }
 0x31c   :  { %v536_v44 = vpop.eup %535 }
 0x31d   :  { %v228_v45 = vmul.f32 %v536_v44, %v532_v38 }
 0x31f   :  { %507 = vmatprep.mubr.msk.f32.mxu1 %vm59_vm0, %v228_v45 }
 0x320   :  { %v538_v46 = vpop.eup %537 }
 0x321   :  { %v230_v47 = vmul.f32 %v538_v46, %v534_v40 }
 0x323   :  { %508 = vmatmul.mubr.msk.f32.vlgmr.msra.gmra.mxu1 %vm59_vm0, %v230_v47 }
 0x3e3   :  { %v509_v54 = vpop.f32.mrf.mxu1 }
 0x3e4   :  { %v317_v55 = vadd.f32 %v509_v54, %v474_v52 }
 0x3e5   :  { %v311_v57 = vpop.f32.mrf.mxu1 }
 0x3e6   :  { %v325_v58 = vmul.f32 %v477_v53, %v317_v55  ;;  %v312_v59 = vadd.f32 %v474_v52, %v311_v57 }
 0x3e8   :  { %v331_v60 = vadd.f32 %v478_v56, %v325_v58  ;;  %v324_v61 = vmul.f32 %v477_v53, %v312_v59 }
 0x3ea   :  { %v333_v62 = vmax.f32 %v331_v60, 0.0  ;;  %v330_v63 = vadd.f32 %v478_v56, %v324_v61 }
 0x3ec   :  { %v332_v0 = vmax.f32 %v330_v63, 0.0  ;;  %v335_v2 = vmul.f32 %v333_v62, %v644_v9 }
 0x3ee   :  { %v334_v3 = vmul.f32 %v332_v0, %v641_v6  ;;  %v341_v4 = vadd.f32 %v479_v1, %v335_v2 }
 0x3f0   :  { %v340_v5 = vadd.f32 %v479_v1, %v334_v3  ;;  %v343_v8 = vmax.f32 %v341_v4, 0.0 }
 0x3f2   :  { %v342_v7 = vmax.f32 %v340_v5, 0.0 }
 0x3f4   :  { %518 = vmatprep.mubr.msk.f32.mxu0 %vm348_vm3, %v342_v7 }
 0x3f5   :  { %519 = vmatmul.mubr.msk.f32.vlgmr.msra.gmra.mxu0 %vm348_vm3, %v343_v8 }
 0x4b5   :  { %v520_v10 = vpop.f32.mrf.mxu0 }
 0x4b7   :  { %v421_v11 = vpop.f32.mrf.mxu0 }
 0x4b8   :  { %430 = vxpose.xlu1.b32.start [1/2] (short) (narrow) %v421_v11, 8 }
 0x4bc   :  { %431 = vxpose.xlu1.b32.end [2/2] (short) (narrow) %v520_v10, 8 }
 0x534   :  { %v446_v13 = vpop.trf.xlu1 }
 0x535   :  { %v463_v14 = vadd.f32 %v462_v12, %v446_v13 }
 0x537   :  { %465 = vst.msk [vmem:[%s661_s3] sm:$0x1] %vm464_vm4, %v463_v14 }
 0x538   :  { %470 = vsyncpa [#allocation3], 1 }
 0x539   :  { %471 = vsyncpa [#allocation5], 1 }

</bundles_post_ra>
